<compile_context>
chip_gen: v6e
topology: v6e:2x2x1
jax: 0.10.0
libtpu: 0.0.40
codegen_flags: <defaults>
</compile_context>

<pallas_src>
import jax
import jax.numpy as jnp
import numpy as np
from jax import lax
from jax.experimental import pallas as pl
from jax.experimental.pallas import tpu as pltpu


def attention_kernel(len_ref, q_ref, enc_ref, w_ref, b_ref, out_ref):
    # Blocks: len (Bc,1,1) i32, q (Bc,Tq,H) bf16, enc (Bc,Ts,H) bf16,
    # w (H,3H) bf16 = [W_in | Wq^T | Wc^T], b (1,H) f32, out (Bc,Tq,H).
    q = q_ref[...]
    enc = enc_ref[...]
    bc, tq, h = q.shape
    ts = enc.shape[1]

    # Static slices of the fused weight slab (single DMA'd VMEM resident).
    w_in = w_ref[:, 0:h]            # (H, H): q_proj = q @ W_in
    w_q_t = w_ref[:, h:2 * h]       # (H, H): W_out[:, :H]^T
    w_c_t = w_ref[:, 2 * h:3 * h]   # (H, H): W_out[:, H:]^T

    # energy = (q @ W_in) @ enc^T  -- projection rides the (small) query side.
    q_proj = lax.dot_general(
        q, w_in,
        dimension_numbers=(((2,), (0,)), ((), ())),
        preferred_element_type=jnp.float32)                     # (Bc, Tq, H) f32
    q_proj = q_proj.astype(jnp.bfloat16)
    energy = lax.dot_general(
        q_proj, enc,
        dimension_numbers=(((2,), (2,)), ((0,), (0,))),
        preferred_element_type=jnp.float32)                     # (Bc, Tq, Ts) f32

    # Length mask (vectorized; -1e30 instead of -inf avoids NaN on empty rows).
    lens = len_ref[...]                                         # (Bc, 1, 1) i32
    col = lax.broadcasted_iota(jnp.int32, (bc, 1, ts), 2)       # (Bc, 1, Ts)
    valid = col < lens                                          # (Bc, 1, Ts)
    energy = jnp.where(valid, energy, -1e30)

    # Softmax over source positions (f32 math; divide rides the EUP slot).
    m = jnp.max(energy, axis=-1, keepdims=True)
    e = jnp.exp(energy - m)
    denom = jnp.sum(e, axis=-1, keepdims=True)
    attn = e * pl.reciprocal(denom, approx=True)                # ~1e-3 norm err

    # context = attn @ encoder_outputs
    context = lax.dot_general(
        attn.astype(jnp.bfloat16), enc,
        dimension_numbers=(((2,), (1,)), ((0,), (0,))),
        preferred_element_type=jnp.float32)                     # (Bc, Tq, H) f32

    # linear_out(cat(q, context)) = q @ Wq^T + context @ Wc^T + b, then tanh.
    out = lax.dot_general(
        q, w_q_t,
        dimension_numbers=(((2,), (0,)), ((), ())),
        preferred_element_type=jnp.float32)
    out = out + lax.dot_general(
        context.astype(jnp.bfloat16), w_c_t,
        dimension_numbers=(((2,), (0,)), ((), ())),
        preferred_element_type=jnp.float32)
    out = out + b_ref[...]                                      # (1, H) broadcast

    out_ref[...] = jnp.tanh(out).astype(out_ref.dtype)


def _divisors_desc(n):
    return [d for d in range(n, 0, -1) if n % d == 0]


def _block_vmem_bytes(bb, tq, ts, h, out_itemsize):
    """Rough per-grid-step VMEM footprint for a batch chunk of size bb."""
    pipelined = 2 * (bb * tq * h * 2            # query block (bf16), double-buffered
                     + bb * ts * h * 2          # encoder block (bf16)
                     + bb * tq * h * out_itemsize)   # output block
    weights = 2 * (h * 3 * h * 2 + h * 4)       # weight slab + bias (double-buffered)
    interm = bb * (2 * tq * ts * 4 + 3 * tq * h * 4)  # energy/attn + f32 temporaries
    return pipelined + weights + interm


def _pick_batch_block(B, tq, ts, h, out_itemsize, vmem_budget):
    bb = 1
    for d in _divisors_desc(B):
        if _block_vmem_bytes(d, tq, ts, h, out_itemsize) <= vmem_budget:
            bb = d
            break
    # v7x has 2 TensorCores/chip: keep >= 2 "parallel" grid steps, but only when
    # the per-chunk MXU work dwarfs the ~0.35 us/step grid overhead (never at
    # toy sizes; neutral on single-TC v5e/v6e where one step is cheapest).
    per_chunk_flops = 2 * bb * tq * (3 * h * h + 2 * ts * h)
    if bb == B and B > 1 and per_chunk_flops > 2_000_000:
        bb = next(d for d in _divisors_desc(B) if d <= B // 2)
    return bb


def attention_forward(query, encoder_outputs, src_lengths, w_in, w_out, b_out,
                      *, batch_block=None, vmem_limit_bytes=None):
    """query: (B, Tq, H) f32, encoder_outputs: (B, Ts, H) f32,
       src_lengths: (B,) int, w_in: (H, H), w_out: (H, 2H), b_out: (H,)
       -- PyTorch nn.Linear layouts (y = x @ W.T + b)."""
    B, Tq, H = query.shape
    _, Ts, _ = encoder_outputs.shape

    # Budget defaults to the smallest scoped-VMEM default across generations
    # (16 MiB on v5e); pass vmem_limit_bytes to raise both the budget and the
    # Mosaic scoped-VMEM limit when scaling B on v6e / v7x.
    vmem_budget = vmem_limit_bytes if vmem_limit_bytes is not None else 16 * 1024 * 1024
    if batch_block is None:
        batch_block = _pick_batch_block(B, Tq, Ts, H, query.dtype.itemsize,
                                        vmem_budget)
    assert B % batch_block == 0, "batch_block must divide B"
    grid = (B // batch_block,)

    # One-time wrapper-side layout work: fuse the three weights into a single
    # bf16 slab [W_in | Wq^T | Wc^T] (1 DMA) and cast MXU operands to bf16.
    w_slab = jnp.concatenate(
        [w_in, jnp.transpose(w_out[:, :H]), jnp.transpose(w_out[:, H:])],
        axis=1).astype(jnp.bfloat16)                            # (H, 3H)
    b2d = b_out.reshape(1, H).astype(jnp.float32)               # (1, H)
    lens3d = src_lengths.astype(jnp.int32).reshape(B, 1, 1)     # (B, 1, 1)

    q_bf = query.astype(jnp.bfloat16)
    enc_bf = encoder_outputs.astype(jnp.bfloat16)

    return pl.pallas_call(
        attention_kernel,
        grid=grid,
        in_specs=[
            pl.BlockSpec((batch_block, 1, 1), lambda i: (i, 0, 0)),    # lengths
            pl.BlockSpec((batch_block, Tq, H), lambda i: (i, 0, 0)),   # query
            pl.BlockSpec((batch_block, Ts, H), lambda i: (i, 0, 0)),   # enc outs
            pl.BlockSpec((H, 3 * H), lambda i: (0, 0)),                # weight slab
            pl.BlockSpec((1, H), lambda i: (0, 0)),                    # bias
        ],
        out_specs=pl.BlockSpec((batch_block, Tq, H), lambda i: (i, 0, 0)),
        out_shape=jax.ShapeDtypeStruct((B, Tq, H), query.dtype),
        compiler_params=pltpu.CompilerParams(
            dimension_semantics=("parallel",),     # independent batch chunks
            vmem_limit_bytes=vmem_limit_bytes),
    )(lens3d, q_bf, enc_bf, w_slab, b2d)


def attention_reference(query, encoder_outputs, src_lengths, w_in, w_out, b_out):
    """Pure-JAX f32 mirror of the PyTorch forward, for a correctness check."""
    B, Tq, H = query.shape
    Ts = encoder_outputs.shape[1]
    proj = jnp.einsum("bsh,kh->bsk", encoder_outputs, w_in)
    energy = jnp.einsum("bqh,bsh->bqs", query, proj)
    col = jnp.arange(Ts)[None, None, :]
    mask = col < src_lengths[:, None, None]
    energy = jnp.where(mask, energy, -jnp.inf)
    attn = jax.nn.softmax(energy, axis=-1)
    context = jnp.einsum("bqs,bsh->bqh", attn, encoder_outputs)
    concat = jnp.concatenate([query, context], axis=-1)
    return jnp.tanh(jnp.einsum("bqc,hc->bqh", concat, w_out) + b_out)


if __name__ == "__main__":
    B, Tq, Ts, H = 2, 8, 8, 32
    key = jax.random.PRNGKey(0)
    k1, k2, k3, k4, k5 = jax.random.split(key, 5)

    query = jax.random.normal(k1, (B, Tq, H), dtype=jnp.float32)
    encoder_outputs = jax.random.normal(k2, (B, Ts, H), dtype=jnp.float32)
    src_lengths = jnp.array([5, 8], dtype=jnp.int32)

    # Deterministic parameter init (PyTorch-style uniform bounds).
    bound_in = 1.0 / np.sqrt(H)
    bound_out = 1.0 / np.sqrt(2 * H)
    w_in = jax.random.uniform(k3, (H, H), jnp.float32, -bound_in, bound_in)
    w_out = jax.random.uniform(k4, (H, 2 * H), jnp.float32, -bound_out, bound_out)
    b_out = jax.random.uniform(k5, (H,), jnp.float32, -bound_out, bound_out)

    out = attention_forward(query, encoder_outputs, src_lengths,
                            w_in, w_out, b_out)
    out = jax.block_until_ready(out)

    ref = attention_reference(query, encoder_outputs, src_lengths,
                              w_in, w_out, b_out)
    # bf16 MXU operands with f32 accumulation + approx reciprocal: compare with a
    # bf16-appropriate tolerance (outputs are tanh-bounded to [-1, 1]).
    np.testing.assert_allclose(np.asarray(out), np.asarray(ref),
                               rtol=0.0, atol=5e-2)

    print("KERNEL_OK")
</pallas_src>

<mosaic_0001>
module attributes {stable_mosaic.version = 11 : i64} {
  func.func @attention_kernel(%arg0: i32, %arg1: memref<2x1x1xi32, #tpu.memory_space<vmem>>, %arg2: memref<2x8x32xbf16, #tpu.memory_space<vmem>>, %arg3: memref<2x8x32xbf16, #tpu.memory_space<vmem>>, %arg4: memref<32x96xbf16, #tpu.memory_space<vmem>>, %arg5: memref<1x32xf32, #tpu.memory_space<vmem>>, %arg6: memref<2x8x32xf32, #tpu.memory_space<vmem>>) attributes {dimension_semantics = [#tpu.dimension_semantics<parallel>], iteration_bounds = array<i64: 1>, scalar_prefetch = 0 : i64, scratch_operands = 0 : i64, tpu.core_type = #tpu.core_type<tc>, window_params = [{transform_indices = @transform_0, window_bounds = array<i64: 2, 1, 1>}, {transform_indices = @transform_1, window_bounds = array<i64: 2, 8, 32>}, {transform_indices = @transform_2, window_bounds = array<i64: 2, 8, 32>}, {pipeline_mode = #tpu.pipeline_mode<synchronous>, transform_indices = @transform_3, window_bounds = array<i64: 32, 96>}, {pipeline_mode = #tpu.pipeline_mode<synchronous>, transform_indices = @transform_4, window_bounds = array<i64: 1, 32>}, {transform_indices = @transform_5, window_bounds = array<i64: 2, 8, 32>}]} {
    %c0 = arith.constant 0 : index
    %c0_0 = arith.constant 0 : index
    %c0_1 = arith.constant 0 : index
    %0 = vector.load %arg2[%c0, %c0_0, %c0_1] : memref<2x8x32xbf16, #tpu.memory_space<vmem>>, vector<2x8x32xbf16>
    %c0_2 = arith.constant 0 : index
    %c0_3 = arith.constant 0 : index
    %c0_4 = arith.constant 0 : index
    %1 = vector.load %arg3[%c0_2, %c0_3, %c0_4] : memref<2x8x32xbf16, #tpu.memory_space<vmem>>, vector<2x8x32xbf16>
    %c0_5 = arith.constant 0 : index
    %c0_6 = arith.constant 0 : index
    %2 = vector.load %arg4[%c0_5, %c0_6] : memref<32x96xbf16, #tpu.memory_space<vmem>>, vector<32x32xbf16>
    %c0_7 = arith.constant 0 : index
    %c32 = arith.constant 32 : index
    %3 = vector.load %arg4[%c0_7, %c32] : memref<32x96xbf16, #tpu.memory_space<vmem>>, vector<32x32xbf16>
    %c0_8 = arith.constant 0 : index
    %c64 = arith.constant 64 : index
    %4 = vector.load %arg4[%c0_8, %c64] : memref<32x96xbf16, #tpu.memory_space<vmem>>, vector<32x32xbf16>
    %cst = arith.constant dense<0.000000e+00> : vector<2x8x32xf32>
    %5 = tpu.matmul %0, %2, %cst {dimension_numbers = #tpu.dot_dimension_numbers<[2], [0], [0, 1], [1], [0, 0, 0, 1, 1, 1], [], []>} : vector<2x8x32xbf16>, vector<32x32xbf16>, vector<2x8x32xf32> -> vector<2x8x32xf32>
    %6 = arith.truncf %5 : vector<2x8x32xf32> to vector<2x8x32xbf16>
    %cst_9 = arith.constant dense<0.000000e+00> : vector<2x8x8xf32>
    %7 = tpu.matmul %6, %1, %cst_9 {dimension_numbers = #tpu.dot_dimension_numbers<[2], [2], [1], [1], [0, 0, 0, 1, 1, 1], [0], [0]>} : vector<2x8x32xbf16>, vector<2x8x32xbf16>, vector<2x8x8xf32> -> vector<2x8x8xf32>
    %c0_10 = arith.constant 0 : index
    %c0_11 = arith.constant 0 : index
    %c0_12 = arith.constant 0 : index
    %8 = vector.load %arg1[%c0_10, %c0_11, %c0_12] : memref<2x1x1xi32, #tpu.memory_space<vmem>>, vector<2x1x1xi32>
    %9 = tpu.iota {dimensions = array<i32: 2>} : vector<2x1x8xi32>
    %10 = vector.broadcast %8 : vector<2x1x1xi32> to vector<2x1x8xi32>
    %11 = arith.cmpi slt, %9, %10 : vector<2x1x8xi32>
    %cst_13 = arith.constant -1.000000e+30 : f32
    %12 = vector.shape_cast %11 : vector<2x1x8xi1> to vector<2x1x8xi1>
    %13 = vector.broadcast %12 : vector<2x1x8xi1> to vector<2x8x8xi1>
    %14 = vector.broadcast %cst_13 : f32 to vector<2x8x8xf32>
    %15 = arith.select %13, %7, %14 : vector<2x8x8xi1>, vector<2x8x8xf32>
    %cst_14 = arith.constant dense<0xFF800000> : vector<2x8xf32>
    %16 = vector.multi_reduction <maximumf>, %15, %cst_14 [2] : vector<2x8x8xf32> to vector<2x8xf32>
    %17 = vector.shape_cast %16 : vector<2x8xf32> to vector<2x8x1xf32>
    %18 = vector.broadcast %17 : vector<2x8x1xf32> to vector<2x8x8xf32>
    %19 = arith.subf %15, %18 : vector<2x8x8xf32>
    %20 = math.exp %19 : vector<2x8x8xf32>
    %cst_15 = arith.constant dense<0.000000e+00> : vector<2x8xf32>
    %21 = vector.multi_reduction <add>, %20, %cst_15 [2] : vector<2x8x8xf32> to vector<2x8xf32>
    %22 = vector.shape_cast %21 : vector<2x8xf32> to vector<2x8x1xf32>
    %23 = tpu.reciprocal %22 {approx = true} : vector<2x8x1xf32> -> vector<2x8x1xf32>
    %24 = vector.broadcast %23 : vector<2x8x1xf32> to vector<2x8x8xf32>
    %25 = arith.mulf %20, %24 : vector<2x8x8xf32>
    %26 = arith.truncf %25 : vector<2x8x8xf32> to vector<2x8x8xbf16>
    %cst_16 = arith.constant dense<0.000000e+00> : vector<2x8x32xf32>
    %27 = tpu.matmul %26, %1, %cst_16 {dimension_numbers = #tpu.dot_dimension_numbers<[2], [1], [1], [2], [0, 0, 0, 1, 1, 2], [0], [0]>} : vector<2x8x8xbf16>, vector<2x8x32xbf16>, vector<2x8x32xf32> -> vector<2x8x32xf32>
    %cst_17 = arith.constant dense<0.000000e+00> : vector<2x8x32xf32>
    %28 = tpu.matmul %0, %3, %cst_17 {dimension_numbers = #tpu.dot_dimension_numbers<[2], [0], [0, 1], [1], [0, 0, 0, 1, 1, 1], [], []>} : vector<2x8x32xbf16>, vector<32x32xbf16>, vector<2x8x32xf32> -> vector<2x8x32xf32>
    %29 = arith.truncf %27 : vector<2x8x32xf32> to vector<2x8x32xbf16>
    %cst_18 = arith.constant dense<0.000000e+00> : vector<2x8x32xf32>
    %30 = tpu.matmul %29, %4, %cst_18 {dimension_numbers = #tpu.dot_dimension_numbers<[2], [0], [0, 1], [1], [0, 0, 0, 1, 1, 1], [], []>} : vector<2x8x32xbf16>, vector<32x32xbf16>, vector<2x8x32xf32> -> vector<2x8x32xf32>
    %31 = arith.addf %28, %30 : vector<2x8x32xf32>
    %c0_19 = arith.constant 0 : index
    %c0_20 = arith.constant 0 : index
    %32 = vector.load %arg5[%c0_19, %c0_20] : memref<1x32xf32, #tpu.memory_space<vmem>>, vector<1x32xf32>
    %33 = vector.shape_cast %32 : vector<1x32xf32> to vector<1x1x32xf32>
    %34 = vector.broadcast %33 : vector<1x1x32xf32> to vector<2x8x32xf32>
    %35 = arith.addf %31, %34 : vector<2x8x32xf32>
    %36 = math.tanh %35 : vector<2x8x32xf32>
    %c0_21 = arith.constant 0 : index
    %c0_22 = arith.constant 0 : index
    %c0_23 = arith.constant 0 : index
    %37 = vector.load %arg6[%c0_21, %c0_22, %c0_23] : memref<2x8x32xf32, #tpu.memory_space<vmem>>, vector<2x8x32xf32>
    tpu.vector_store %arg6[%c0_21, %c0_22, %c0_23], %36 {strides = array<i32>} : memref<2x8x32xf32, #tpu.memory_space<vmem>>, vector<2x8x32xf32>,
    return
  }
  func.func @transform_0(%arg0: i32) -> (i32, i32, i32) {
    %c0_i32 = arith.constant 0 : i32
    %c0_i32_0 = arith.constant 0 : i32
    %c0_i32_1 = arith.constant 0 : i32
    return %arg0, %c0_i32, %c0_i32_0 : i32, i32, i32
  }
  func.func @transform_1(%arg0: i32) -> (i32, i32, i32) {
    %c0_i32 = arith.constant 0 : i32
    %c0_i32_0 = arith.constant 0 : i32
    %c0_i32_1 = arith.constant 0 : i32
    return %arg0, %c0_i32, %c0_i32_0 : i32, i32, i32
  }
  func.func @transform_2(%arg0: i32) -> (i32, i32, i32) {
    %c0_i32 = arith.constant 0 : i32
    %c0_i32_0 = arith.constant 0 : i32
    %c0_i32_1 = arith.constant 0 : i32
    return %arg0, %c0_i32, %c0_i32_0 : i32, i32, i32
  }
  func.func @transform_3(%arg0: i32) -> (i32, i32) {
    %c0_i32 = arith.constant 0 : i32
    %c0_i32_0 = arith.constant 0 : i32
    %c0_i32_1 = arith.constant 0 : i32
    return %c0_i32, %c0_i32_0 : i32, i32
  }
  func.func @transform_4(%arg0: i32) -> (i32, i32) {
    %c0_i32 = arith.constant 0 : i32
    %c0_i32_0 = arith.constant 0 : i32
    %c0_i32_1 = arith.constant 0 : i32
    return %c0_i32, %c0_i32_0 : i32, i32
  }
  func.func @transform_5(%arg0: i32) -> (i32, i32, i32) {
    %c0_i32 = arith.constant 0 : i32
    %c0_i32_0 = arith.constant 0 : i32
    %c0_i32_1 = arith.constant 0 : i32
    return %arg0, %c0_i32, %c0_i32_0 : i32, i32, i32
  }
}

</mosaic_0001>

<bundles_post_ra>
// kernel: tpu_custom_call.1
= control target key start
LH: loop header
LB: loop body
LE: loop exit
PB: predicated region body
PF: predicated region fallthrough
CT: control target
= control target key end

     0   :  { %10 = vsyncpa [#allocation3], 0  ;;  %s826_s0 = inlined_call_operand.vmem [shape: s32[2,1,1], index: 0, kind: input, shape index: {}]   ;;  %s827_s1 = inlined_call_operand.hbm [shape: bf16[2,8,32], index: 1, kind: input, shape index: {}]   ;;  %s828_s2 = inlined_call_operand.hbm [shape: bf16[2,8,32], index: 2, kind: input, shape index: {}]   ;;  %s829_s3 = inlined_call_operand.hbm [shape: bf16[32,96], index: 3, kind: input, shape index: {}]   ;;  %s830_s4 = inlined_call_operand.vmem [shape: f32[1,32], index: 4, kind: input, shape index: {}]   ;;  %s831_s5 = inlined_call_operand.hbm [shape: f32[2,8,32], index: 5, kind: output, shape index: {}]  }
   0x1   :  { %11 = vsyncpa [#allocation6], 0 }
   0x2   :  { %12 = vsyncpa [#allocation4], 0  ;;  %s696_s18 = smov [#allocation5]   ;;  %s697_s20 = smov [#allocation2]  }
   0x3   :  { %s32_s19 = sshll.u32 %s696_s18, 4  ;;  %s20_s21 = sshll.u32 %s697_s20, 4  ;;  %s33_s19 = int_to_ptr.vmem [resolvable:$true] %s32_s19  ;;  %s21_s21 = int_to_ptr.vmem [resolvable:$true] %s20_s21 }
   0x4   :  { %s618_s22 = scalar_lea.vmem %s33_s19, 128  ;;  %p623_p1 = scmp.lt.s32.totalorder %s33_s19, %s33_s19 }
   0x5   :  { %p619_p0 = scmp.ne.s32.totalorder %s33_s19, %s618_s22  ;;  %p624_p2 = scmp.lt.s32.totalorder %s618_s22, %s618_s22 }
   0x7   :  { %p625_p3 = por %p624_p2, %p623_p1 }
   0x9   :  { %p626_p4 = pnand %p625_p3, %p619_p0 }
   0xb   :  { %629 = shalt.err (!%p626_p4)
}
   0xc   :  { %s698_s23 = smov 64   ;;  %s699_s24 = smov 4  }
   0xd   :  { %38 = dma.hbm_to_vmem [thread:$0]  %s828_s2, 128, %s33_s19, [#allocation6], %s698_s23, %s698_s23, %s699_s24  }
   0xe   :  { %s638_s27 = scalar_lea.vmem %s21_s21, 128  ;;  %p643_p6 = scmp.lt.s32.totalorder %s21_s21, %s21_s21 }
   0xf   :  { %p639_p5 = scmp.ne.s32.totalorder %s21_s21, %s638_s27  ;;  %p644_p7 = scmp.lt.s32.totalorder %s638_s27, %s638_s27 }
  0x11   :  { %p645_p8 = por %p644_p7, %p643_p6 }
  0x13   :  { %p646_p9 = pnand %p645_p8, %p639_p5 }
  0x15   :  { %649 = shalt.err (!%p646_p9)
}
  0x16   :  { %26 = dma.hbm_to_vmem [thread:$0]  %s827_s1, 128, %s21_s21, [#allocation3], %s698_s23, %s698_s23, %s699_s24  }
  0x17   :  { %s700_s30 = smov [#allocation7]  }
  0x18   :  { %s44_s6 = sshll.u32 %s700_s30, 4  ;;  %s45_s6 = int_to_ptr.vmem [resolvable:$true] %s44_s6 }
  0x19   :  { %s658_s7 = scalar_lea.vmem %s45_s6, 256  ;;  %p663_p11 = scmp.lt.s32.totalorder %s45_s6, %s45_s6 }
  0x1a   :  { %p659_p10 = scmp.ne.s32.totalorder %s45_s6, %s658_s7  ;;  %p664_p12 = scmp.lt.s32.totalorder %s658_s7, %s658_s7 }
  0x1c   :  { %p665_p13 = por %p664_p12, %p663_p11 }
  0x1e   :  { %p666_p0 = pnand %p665_p13, %p659_p10 }
  0x20   :  { %669 = shalt.err (!%p666_p0)
}
  0x21   :  { %50 = dma.hbm_to_vmem [thread:$0]  %s829_s3, 256, %s45_s6, [#allocation6], %s698_s23, %s698_s23, %s699_s24  }
  0x22   :  { %690 = dma.done.wait [#allocation3], 128  }
  0x23   :  { %691 = vsyncadd [#allocation3], 4294967168 }
  0x24   :  { %692 = dma.done.wait [#allocation6], 384  }
  0x25   :  { %693 = vsyncadd [#allocation6], 4294966912  ;;  %v701_v0 = vmov 0.0   ;;  %vm702_vm0 = vmmov 0   ;;  %v759_v1 = vld [vmem:[#allocation7 + $0x8] sm:$0xff]   ;;  %v762_v2 = vld [vmem:[#allocation7] sm:$0xff]   ;;  %v229_v18 = vlaneseq }
  0x26   :  { %534 = vmatprep.subr.bf16.mxu0 %v701_v0  ;;  %538 = vmatprep.mubr.msk.bf16.mxu0 %vm702_vm0, %v701_v0  ;;  %vm88_vm1 = vcmask 261120   ;;  %v65_v3 = vld [vmem:[#allocation5] sm:$0xf]  ;;  %v766_v5 = vld [vmem:[#allocation5 + $0x4] sm:$0xf]  ;;  %v768_v6 = vld [vmem:[#allocation2] sm:$0xff]  }
  0x27   :  { %542 = vmatprep.subr.bf16.mxu1 %v701_v0  ;;  %544 = vmatprep.mubr.msk.bf16.mxu1 %vm702_vm0, %v701_v0  ;;  %v139_v4 = vsel %vm88_vm1, %v65_v3, 0  ;;  %v185_v7 = vsel %vm88_vm1, %v766_v5, 0  ;;  %v227_v8 = vld [vmem:[%s826_s0] sm:$0x1]  ;;  %v703_v9 = vmov 0   ;;  %vm281_vm2 = vcmask 1043456  }
  0x28   :  { %535 = vmatpush3.bf16.msra.mxu0 %v759_v1  ;;  %543 = vmatpush3.bf16.xpose.msra.mxu1 %v139_v4  ;;  %v228_v10 = vld [vmem:[%s826_s0 + $0x1] sm:$0x1]  ;;  %v282_v12 = vsel %vm281_vm2, %v65_v3, 0  ;;  %v235_v19 = vshrl.u32 %v229_v18, 7  ;;  %v230_v23 = vand.u32 127, %v229_v18  ;;  %vm253_vm4 = vcmask 64512  }
  0x29   :  { %536 = vmatprep.subr.bf16.mxu0 %v701_v0  ;;  %554 = vmatprep.subr.bf16.mxu1 %v701_v0  ;;  %v327_v48 = vsel %vm281_vm2, %v766_v5, 0  ;;  %s704_s0 = smov 96   ;;  %s705_s13 = smov [#allocation8]  }
  0x2a   :  { %594 = vset.pattern.permute.xlu0 %v703_v9  ;;  %v236_v20 = vsub.s32 0, %v235_v19  ;;  %s491_s14 = sshll.u32 %s705_s13, 4  ;;  %s492_s14 = int_to_ptr.vmem [resolvable:$true] %s491_s14 }
  0x2b   :  { %232 = vperm.xlu0 %594, %v227_v8   ;;  %s670_s15 = scalar_lea.vmem %s492_s14, 256  ;;  %p675_p2 = scmp.lt.s32.totalorder %s492_s14, %s492_s14 }
  0x2c   :  { %537 = vmatpush3.bf16.msra.mxu0 %v762_v2  ;;  %p671_p1 = scmp.ne.s32.totalorder %s492_s14, %s670_s15  ;;  %p676_p3 = scmp.lt.s32.totalorder %s670_s15, %s670_s15 }
  0x2d   :  { %548 = vmatprep.subr.bf16.mxu0 %v701_v0 }
  0x2e   :  { %p677_p4 = por %p676_p3, %p675_p2 }
  0x2f   :  { %539 = vmatmul.mubr.msk.bf16.vlgmr.msra.gmra.mxu0 %vm88_vm1, %v768_v6  ;;  %239 = vperm.xlu0 %594, %v228_v10  }
  0x30   :  { %549 = vmatpush3.bf16.xpose.msra.mxu0 %v185_v7  ;;  %550 = vmatprep.mubr.msk.bf16.mxu0 %vm702_vm0, %v701_v0  ;;  %p678_p5 = pnand %p677_p4, %p671_p1 }
  0x31   :  { %560 = vmatprep.subr.bf16.mxu0 %v701_v0 }
  0xa6   :  { %v233_v21 = vpop.permute.xlu0 %232 }
  0xa7   :  { %v237_v22 = vrot.slane %v233_v21, %v236_v20 }
  0xa9   :  { %vm245_vm3 = vcmp.lt.s32.totalorder %v230_v23, %v237_v22 }
  0xaa   :  { %v240_v24 = vpop.permute.xlu0 %239 }
  0xab   :  { %v244_v25 = vrot.slane %v240_v24, %v236_v20 }
  0xad   :  { %vm246_vm5 = vcmp.lt.s32.totalorder %v230_v23, %v244_v25 }
  0xef   :  { %v126_v11 = vpop.f32.mrf.mxu0 }
  0xf0   :  { %v133_v13 = vpack.c.bf16 %v126_v11, %v126_v11 }
  0xf1   :  { %v540_v14 = vpop.f32.mrf.mxu0 }
  0xf2   :  { %545 = vmatmul.mubr.msk.bf16.vlgmr.msra.gmra.mxu1 %vm88_vm1, %v133_v13 }
  0xf3   :  { %v129_v15 = vpop.f32.mrf.mxu0  ;;  %555 = vmatpush3.bf16.msra.mxu1 %v282_v12  ;;  %556 = vmatprep.mubr.msk.bf16.mxu1 %vm702_vm0, %v701_v0 }
  0xf4   :  { %v134_v16 = vpack.c.bf16 %v129_v15, %v129_v15  ;;  %566 = vmatprep.subr.bf16.mxu1 %v701_v0 }
  0xf5   :  { %v541_v17 = vpop.f32.mrf.mxu0 }
  0xf6   :  { %551 = vmatmul.mubr.msk.bf16.vlgmr.msra.gmra.mxu0 %vm88_vm1, %v134_v16 }
  0xf7   :  { %562 = vmatprep.mubr.msk.bf16.mxu0 %vm702_vm0, %v701_v0  ;;  %561 = vmatpush3.bf16.msra.mxu0 %v327_v48 }
  0xf8   :  { %574 = vmatprep.subr.bf16.mxu0 %v701_v0 }
 0x1b2   :  { %v175_v26 = vpop.f32.mrf.mxu1 }
 0x1b3   :  { %v251_v27 = vsel %vm245_vm3, %v175_v26, -1e+30 }
 0x1b4   :  { %v546_v28 = vpop.f32.mrf.mxu1  ;;  %v254_v29 = vsel %vm253_vm4, %v251_v27, -inf }
 0x1b5   :  { %255 = vmax.xlane.f32.xlu1 %v254_v29 }
 0x1b6   :  { %v178_v30 = vpop.f32.mrf.mxu1  ;;  %v221_v31 = vpop.f32.mrf.mxu0 }
 0x1b7   :  { %v252_v32 = vsel %vm246_vm5, %v221_v31, -1e+30 }
 0x1b8   :  { %v547_v33 = vpop.f32.mrf.mxu1  ;;  %v552_v34 = vpop.f32.mrf.mxu0  ;;  %v257_v35 = vsel %vm253_vm4, %v252_v32, -inf }
 0x1b9   :  { %258 = vmax.xlane.f32.xlu1 %v257_v35 }
 0x1ba   :  { %v224_v36 = vpop.f32.mrf.mxu0 }
 0x1bc   :  { %v553_v37 = vpop.f32.mrf.mxu0 }
 0x23e   :  { %v256_v38 = vpop.xlane.xlu1 %255 }
 0x23f   :  { %v260_v39 = vsub.f32 %v251_v27, %v256_v38 }
 0x241   :  { %v262_v40 = vmul.f32 1.442695, %v260_v39 }
 0x242   :  { %v259_v41 = vpop.xlane.xlu1 %258 }
 0x243   :  { %598 = vpow2.f32 %v262_v40  ;;  %v261_v42 = vsub.f32 %v252_v32, %v259_v41 }
 0x245   :  { %v264_v43 = vmul.f32 1.442695, %v261_v42 }
 0x247   :  { %600 = vpow2.f32 %v264_v43 }
 0x250   :  { %v599_v44 = vpop.eup %598 }
 0x251   :  { %v266_v45 = vsel %vm253_vm4, %v599_v44, 0.0 }
 0x252   :  { %267 = vadd.xlane.f32.xlu0 %v266_v45 }
 0x254   :  { %v601_v46 = vpop.eup %600 }
 0x255   :  { %v269_v47 = vsel %vm253_vm4, %v601_v46, 0.0 }
 0x256   :  { %270 = vadd.xlane.f32.xlu1 %v269_v47 }
 0x267   :  { %378 = vrot.lane.b32.xlu1 %v759_v1, %s698_s23 }
 0x26b   :  { %428 = vrot.lane.b32.xlu1 %v759_v1, %s704_s0 }
 0x26f   :  { %376 = vrot.lane.b32.xlu1 %v762_v2, %s698_s23 }
 0x273   :  { %426 = vrot.lane.b32.xlu1 %v762_v2, %s704_s0 }
 0x2db   :  { %v268_v49 = vpop.xlane.xlu0 %267 }
 0x2dc   :  { %602 = vrcp.f32 %v268_v49 }
 0x2df   :  { %v271_v50 = vpop.xlane.xlu1 %270 }
 0x2e0   :  { %604 = vrcp.f32 %v271_v50 }
 0x2e3   :  { %v379_v51 = vpop.permute.xlu1 %378 }
 0x2e7   :  { %v429_v52 = vpop.permute.xlu1 %428 }
 0x2e9   :  { %v603_v53 = vpop.eup %602 }
 0x2ea   :  { %v274_v54 = vmul.f32 %v603_v53, %v599_v44 }
 0x2eb   :  { %v377_v58 = vpop.permute.xlu1 %376 }
 0x2ec   :  { %v276_v55 = vpack.c.bf16 %v274_v54, %v274_v54 }
 0x2ed   :  { %v605_v56 = vpop.eup %604 }
 0x2ee   :  { %557 = vmatmul.mubr.msk.bf16.vlgmr.msra.gmra.mxu1 %vm253_vm4, %v276_v55  ;;  %v275_v57 = vmul.f32 %v605_v56, %v601_v46 }
 0x2ef   :  { %567 = vmatpush3.bf16.msra.mxu1 %v379_v51  ;;  %570 = vmatprep.mubr.msk.bf16.mxu1 %vm702_vm0, %v701_v0  ;;  %v427_v60 = vpop.permute.xlu1 %426 }
 0x2f0   :  { %v277_v59 = vpack.c.bf16 %v275_v57, %v275_v57  ;;  %568 = vmatprep.subr.bf16.mxu1 %v701_v0 }
 0x2f2   :  { %563 = vmatmul.mubr.msk.bf16.vlgmr.msra.gmra.mxu0 %vm253_vm4, %v277_v59 }
 0x2f3   :  { %575 = vmatpush3.bf16.msra.mxu0 %v429_v52  ;;  %569 = vmatpush3.bf16.msra.mxu1 %v377_v58 }
 0x2f4   :  { %576 = vmatprep.subr.bf16.mxu0 %v701_v0  ;;  %578 = vmatprep.mubr.msk.bf16.mxu0 %vm702_vm0, %v701_v0 }
 0x2f7   :  { %577 = vmatpush3.bf16.msra.mxu0 %v427_v60 }
 0x2fa   :  { %579 = vmatmul.mubr.msk.bf16.vlgmr.msra.gmra.mxu0 %vm88_vm1, %v768_v6  ;;  %v515_v6 = vld [vmem:[%s830_s4] ss:$0 sm:$0xff] }
 0x3ae   :  { %v318_v61 = vpop.f32.mrf.mxu1 }
 0x3b0   :  { %v558_v62 = vpop.f32.mrf.mxu1 }
 0x3b2   :  { %v321_v63 = vpop.f32.mrf.mxu1  ;;  %v363_v1 = vpop.f32.mrf.mxu0 }
 0x3b3   :  { %v516_v2 = vpack.c.bf16 %v363_v1, %v318_v61 }
 0x3b4   :  { %v559_v3 = vpop.f32.mrf.mxu1  ;;  %v564_v4 = vpop.f32.mrf.mxu0 }
 0x3b5   :  { %571 = vmatmul.mubr.msk.bf16.vlgmr.msra.gmra.mxu1 %vm88_vm1, %v516_v2 }
 0x3b6   :  { %v366_v5 = vpop.f32.mrf.mxu0 }
 0x3b8   :  { %v565_v7 = vpop.f32.mrf.mxu0 }
 0x3ba   :  { %v466_v8 = vpop.f32.mrf.mxu0 }
 0x3bc   :  { %v580_v9 = vpop.f32.mrf.mxu0 }
 0x3be   :  { %v469_v10 = vpop.f32.mrf.mxu0 }
 0x3c0   :  { %v581_v11 = vpop.f32.mrf.mxu0 }
 0x475   :  { %v419_v0 = vpop.f32.mrf.mxu1 }
 0x476   :  { %v467_v12 = vadd.f32 %v466_v8, %v419_v0 }
 0x477   :  { %v572_v13 = vpop.f32.mrf.mxu1 }
 0x478   :  { %v480_v14 = vadd.f32 %v515_v6, %v467_v12 }
 0x479   :  { %v422_v15 = vpop.f32.mrf.mxu1 }
 0x47a   :  { %606 = vtanh.f32 %v480_v14  ;;  %v470_v16 = vadd.f32 %v469_v10, %v422_v15 }
 0x47b   :  { %v573_v17 = vpop.f32.mrf.mxu1 }
 0x47c   :  { %v481_v18 = vadd.f32 %v515_v6, %v470_v16 }
 0x47e   :  { %608 = vtanh.f32 %v481_v18 }
 0x487   :  { %v607_v19 = vpop.eup %606 }
 0x488   :  { %484 = vst.msk [vmem:[#allocation8] sm:$0xff] %vm88_vm1, %v607_v19 }
 0x48b   :  { %v609_v20 = vpop.eup %608 }
 0x48c   :  { %485 = vst.msk [vmem:[#allocation8 + $0x8] sm:$0xff] %vm88_vm1, %v609_v20 }
 0x48d   :  { %681 = shalt.err (!%p678_p5)
}
 0x48e   :  { %s706_s4 = smov 128   ;;  %s707_s16 = smov 8  }
 0x48f   :  { %497 = dma.vmem_to_hbm [thread:$0]  %s492_s14, 256, %s831_s5, [#allocation4], %s706_s4, %s706_s4, %s707_s16  }
 0x490   :  { %694 = dma.done.wait [#allocation4], 256  }
 0x491   :  { %695 = vsyncadd [#allocation4], 4294967040 }
 0x492   :  { %501 = vsyncpa [#allocation3], 1 }
 0x493   :  { %502 = vsyncpa [#allocation6], 1 }
 0x494   :  { %503 = vsyncpa [#allocation4], 1 }

</bundles_post_ra>
